<compile_context>
chip_gen: v6e
topology: v6e:2x2x1
jax: 0.10.0
libtpu: 0.0.40
codegen_flags: <defaults>
</compile_context>

<pallas_src>
import functools

import jax
import jax.numpy as jnp
from jax import lax
from jax.experimental import pallas as pl
from jax.experimental.pallas import tpu as pltpu


def _dropout_kernel(seed_ref, x_ref, o_ref, *, threshold: int, scale: float):
    """Inverted dropout on one (block_rows, cols) tile.

    Random bits come from a counter-based hash (lowbias32 finalizer) of the
    global flat element index mixed with the seed, so every tile draws
    independent bits and the result does not depend on the tiling.
    """
    rows, cols = x_ref.shape
    pid = pl.program_id(0)

    # Global flat index of every element in the 2-D view (int32 -> uint32).
    row = lax.broadcasted_iota(jnp.int32, (rows, cols), 0) + pid * rows
    col = lax.broadcasted_iota(jnp.int32, (rows, cols), 1)
    idx = (row * cols + col).astype(jnp.uint32)

    # Mix the seed in, then lowbias32 finalizer -> well-distributed u32 bits.
    h = idx + seed_ref[0].astype(jnp.uint32) * jnp.uint32(0x9E3779B9)
    h = h ^ (h >> 16)
    h = h * jnp.uint32(0x7FEB352D)
    h = h ^ (h >> 15)
    h = h * jnp.uint32(0x846CA68B)
    h = h ^ (h >> 16)

    # keep ~ Bernoulli(keep_prob) via a 24-bit integer threshold compare.
    keep = (h >> 8).astype(jnp.int32) < jnp.int32(threshold)

    x = x_ref[...]
    kept = x * jnp.asarray(scale, dtype=x.dtype)
    o_ref[...] = jnp.where(keep, kept, jnp.zeros_like(kept))


class Dropout:
    """Pallas TPU implementation of the PyTorch Dropout module."""

    def __init__(self, p: float = 0.5):
        self.p = float(p)
        self.training = True

    def __call__(self, x: jax.Array, seed: int = 0) -> jax.Array:
        if not self.training or self.p == 0.0:
            return x
        if self.p >= 1.0:
            # PyTorch Dropout(p=1.0) drops everything; avoid inf * 0 = NaN.
            return jnp.zeros_like(x)

        keep_prob = 1.0 - self.p
        threshold = min(int(round(keep_prob * (1 << 24))), 1 << 24)
        scale = 1.0 / keep_prob

        orig_shape = x.shape
        total = x.size

        # Lane-dense 2-D view.  Prefer a column width that divides the element
        # count exactly so the reshape is copy-free; pad only for odd sizes.
        cols = None
        for c in (1024, 512, 256, 128):
            if total % c == 0:
                cols = c
                break
        if cols is None:
            cols = 128
            padded = -(-total // cols) * cols
            x2 = jnp.pad(x.reshape(-1), (0, padded - total)).reshape(-1, cols)
        else:
            x2 = x.reshape(total // cols, cols)
        rows = x2.shape[0]

        # ~2 MiB blocks: with in+out double-buffering that is ~8 MiB of VMEM,
        # comfortably inside scoped VMEM on v5e/v6e and v7x.  Rows a multiple
        # of 16 so bf16 inputs tile cleanly.
        itemsize = jnp.dtype(x2.dtype).itemsize
        target_rows = max(16, (2 * 1024 * 1024) // (cols * itemsize))
        target_rows -= target_rows % 16
        block_rows = rows if rows <= target_rows else target_rows
        num_blocks = -(-rows // block_rows)

        seed_arr = jnp.asarray([seed], dtype=jnp.int32)
        kernel = functools.partial(_dropout_kernel, threshold=threshold, scale=scale)

        out2 = pl.pallas_call(
            kernel,
            out_shape=jax.ShapeDtypeStruct(x2.shape, x2.dtype),
            grid=(num_blocks,),
            in_specs=[
                pl.BlockSpec(memory_space=pltpu.MemorySpace.SMEM),   # seed scalar
                pl.BlockSpec((block_rows, cols), lambda i: (i, 0)),  # x tile
            ],
            out_specs=pl.BlockSpec((block_rows, cols), lambda i: (i, 0)),
            compiler_params=pltpu.CompilerParams(
                dimension_semantics=("parallel",),      # shard grid across TCs on v7x
                vmem_limit_bytes=32 * 1024 * 1024,
            ),
        )(seed_arr, x2)

        out = out2.reshape(-1)
        if out.size != total:
            out = out[:total]
        return out.reshape(orig_shape)


if __name__ == "__main__":
    key = jax.random.PRNGKey(0)
    x = jax.random.normal(key, (2, 4, 16, 16), dtype=jnp.float32)  # NCHW

    drop = Dropout(p=0.5)

    # Training mode: random keep mask + 1/(1-p) scaling computed in the kernel.
    y = jax.block_until_ready(drop(x, seed=123))
    assert y.shape == x.shape and y.dtype == x.dtype

    # Surviving elements equal x / (1 - p); dropped elements are exactly 0.
    scaled = x / (1.0 - drop.p)
    ok = jnp.all((y == 0) | (jnp.abs(y - scaled) < 1e-5))
    assert bool(ok), "dropout output inconsistent with mask/scale semantics"

    # Mask is non-trivial and deterministic for a fixed seed.
    n_kept = int(jnp.sum(y != 0))
    assert 0 < n_kept < x.size, f"degenerate mask: kept {n_kept}/{x.size}"
    y_again = jax.block_until_ready(drop(x, seed=123))
    assert bool(jnp.all(y == y_again)), "same seed must give same mask"

    # Element count not divisible by 128 exercises the padded fallback path.
    x_odd = jax.random.normal(jax.random.PRNGKey(1), (3, 5, 7, 11), dtype=jnp.float32)
    y_odd = jax.block_until_ready(drop(x_odd, seed=7))
    scaled_odd = x_odd / (1.0 - drop.p)
    assert bool(jnp.all((y_odd == 0) | (jnp.abs(y_odd - scaled_odd) < 1e-5)))

    # Eval mode: identity passthrough.
    drop.training = False
    y_eval = jax.block_until_ready(drop(x))
    assert bool(jnp.all(y_eval == x))

    print("KERNEL_OK")
</pallas_src>

<mosaic_0001>
module attributes {stable_mosaic.version = 11 : i64} {
  func.func @_dropout_kernel(%arg0: i32, %arg1: memref<1xi32, #tpu.memory_space<smem>>, %arg2: memref<2x1024xf32, #tpu.memory_space<vmem>>, %arg3: memref<2x1024xf32, #tpu.memory_space<vmem>>) attributes {dimension_semantics = [#tpu.dimension_semantics<parallel>], iteration_bounds = array<i64: 1>, scalar_prefetch = 0 : i64, scratch_operands = 0 : i64, tpu.core_type = #tpu.core_type<tc>, window_params = [{transform_indices = @transform_0, window_bounds = array<i64: 1>}, {transform_indices = @transform_1, window_bounds = array<i64: 2, 1024>}, {transform_indices = @transform_2, window_bounds = array<i64: 2, 1024>}]} {
    %0 = tpu.iota {dimensions = array<i32: 0>} : vector<2x1024xi32>
    %c2_i32 = arith.constant 2 : i32
    %1 = arith.muli %arg0, %c2_i32 : i32
    %2 = vector.broadcast %1 : i32 to vector<2x1024xi32>
    %3 = arith.addi %0, %2 : vector<2x1024xi32>
    %4 = tpu.iota {dimensions = array<i32: 1>} : vector<2x1024xi32>
    %c1024_i32 = arith.constant 1024 : i32
    %5 = vector.broadcast %c1024_i32 : i32 to vector<2x1024xi32>
    %6 = arith.muli %3, %5 : vector<2x1024xi32>
    %7 = arith.addi %6, %4 : vector<2x1024xi32>
    %c0 = arith.constant 0 : index
    %8 = memref.load %arg1[%c0] : memref<1xi32, #tpu.memory_space<smem>>
    %c-1640531527_i32 = arith.constant -1640531527 : i32
    %9 = arith.muli %8, %c-1640531527_i32 : i32
    %10 = vector.broadcast %9 : i32 to vector<2x1024xi32>
    %11 = arith.addi %7, %10 : vector<2x1024xi32>
    %c16_i32 = arith.constant 16 : i32
    %12 = vector.broadcast %c16_i32 : i32 to vector<2x1024xi32>
    %13 = arith.shrui %11, %12 : vector<2x1024xi32>
    %14 = arith.xori %11, %13 : vector<2x1024xi32>
    %c2146121005_i32 = arith.constant 2146121005 : i32
    %15 = vector.broadcast %c2146121005_i32 : i32 to vector<2x1024xi32>
    %16 = arith.muli %14, %15 : vector<2x1024xi32>
    %c15_i32 = arith.constant 15 : i32
    %17 = vector.broadcast %c15_i32 : i32 to vector<2x1024xi32>
    %18 = arith.shrui %16, %17 : vector<2x1024xi32>
    %19 = arith.xori %16, %18 : vector<2x1024xi32>
    %c-2073254261_i32 = arith.constant -2073254261 : i32
    %20 = vector.broadcast %c-2073254261_i32 : i32 to vector<2x1024xi32>
    %21 = arith.muli %19, %20 : vector<2x1024xi32>
    %c16_i32_0 = arith.constant 16 : i32
    %22 = vector.broadcast %c16_i32_0 : i32 to vector<2x1024xi32>
    %23 = arith.shrui %21, %22 : vector<2x1024xi32>
    %24 = arith.xori %21, %23 : vector<2x1024xi32>
    %c8_i32 = arith.constant 8 : i32
    %25 = vector.broadcast %c8_i32 : i32 to vector<2x1024xi32>
    %26 = arith.shrui %24, %25 : vector<2x1024xi32>
    %c8388608_i32 = arith.constant 8388608 : i32
    %27 = vector.broadcast %c8388608_i32 : i32 to vector<2x1024xi32>
    %28 = arith.cmpi slt, %26, %27 : vector<2x1024xi32>
    %c0_1 = arith.constant 0 : index
    %c0_2 = arith.constant 0 : index
    %29 = vector.load %arg2[%c0_1, %c0_2] : memref<2x1024xf32, #tpu.memory_space<vmem>>, vector<2x1024xf32>
    %cst = arith.constant 2.000000e+00 : f32
    %30 = vector.broadcast %cst : f32 to vector<2x1024xf32>
    %31 = arith.mulf %29, %30 : vector<2x1024xf32>
    %cst_3 = arith.constant 0.000000e+00 : f32
    %32 = vector.broadcast %cst_3 : f32 to vector<2x1024xf32>
    %33 = arith.select %28, %31, %32 : vector<2x1024xi1>, vector<2x1024xf32>
    %c0_4 = arith.constant 0 : index
    %c0_5 = arith.constant 0 : index
    %34 = vector.load %arg3[%c0_4, %c0_5] : memref<2x1024xf32, #tpu.memory_space<vmem>>, vector<2x1024xf32>
    tpu.vector_store %arg3[%c0_4, %c0_5], %33 {strides = array<i32>} : memref<2x1024xf32, #tpu.memory_space<vmem>>, vector<2x1024xf32>,
    return
  }
  func.func @transform_0(%arg0: i32) -> i32 {
    %c0_i32 = arith.constant 0 : i32
    %c0_i32_0 = arith.constant 0 : i32
    return %c0_i32 : i32
  }
  func.func @transform_1(%arg0: i32) -> (i32, i32) {
    %c0_i32 = arith.constant 0 : i32
    %c0_i32_0 = arith.constant 0 : i32
    return %arg0, %c0_i32 : i32, i32
  }
  func.func @transform_2(%arg0: i32) -> (i32, i32) {
    %c0_i32 = arith.constant 0 : i32
    %c0_i32_0 = arith.constant 0 : i32
    return %arg0, %c0_i32 : i32, i32
  }
}

</mosaic_0001>

<bundles_post_ra>
// kernel: tpu_custom_call.1
= control target key start
LH: loop header
LB: loop body
LE: loop exit
PB: predicated region body
PF: predicated region fallthrough
CT: control target
= control target key end

     0   :  { %8 = vsyncpa [#allocation4], 0  ;;  %s353_s0 = inlined_call_operand.<no memory space> [shape: s32[1], index: 0, kind: input, shape index: {}]   ;;  %s354_s1 = inlined_call_operand.hbm [shape: f32[2,1024], index: 1, kind: input, shape index: {}]   ;;  %s355_s2 = inlined_call_operand.hbm [shape: f32[2,1024], index: 2, kind: output, shape index: {}]  }
   0x1   :  { %9 = vsyncpa [#allocation5], 0  ;;  %s303_s9 = smov [#allocation3]  }
   0x2   :  { %s18_s10 = sshll.u32 %s303_s9, 4  ;;  %s19_s10 = int_to_ptr.vmem [resolvable:$true] %s18_s10 }
   0x3   :  { %s267_s11 = scalar_lea.vmem %s19_s10, 256  ;;  %p272_p1 = scmp.lt.s32.totalorder %s19_s10, %s19_s10 }
   0x4   :  { %p268_p0 = scmp.ne.s32.totalorder %s19_s10, %s267_s11  ;;  %p273_p2 = scmp.lt.s32.totalorder %s267_s11, %s267_s11 }
   0x6   :  { %p274_p3 = por %p273_p2, %p272_p1 }
   0x8   :  { %p275_p4 = pnand %p274_p3, %p268_p0 }
   0xa   :  { %278 = shalt.err (!%p275_p4)
}
   0xb   :  { %21 = dma.hbm_to_vmem [thread:$0]  %s354_s1, 256, %s19_s10, [#allocation4]  }
   0xc   :  { %299 = dma.done.wait [#allocation4], 256  }
   0xd   :  { %300 = vsyncadd [#allocation4], 4294967040  ;;  %v25_v0 = vlaneseq  ;;  %s49_s16 = smul.u32 2654435769, %s353_s0  ;;  %v304_v1 = vmov 1983009808  }
   0xe   :  { %v147_v2 = vunpack.c.l.s4 %v304_v1  ;;  %v139_v19 = vld [vmem:[#allocation3] sm:$0xff]  ;;  %s305_s0 = smov [#allocation6]  }
   0xf   :  { %v26_v3 = vshrl.u32 %v25_v0, 7  ;;  %v31_v4 = vand.u32 127, %v25_v0  ;;  %v50_v5 = vstv %s49_s16  ;;  %v141_v28 = vmul.f32 2.0, %v139_v19  ;;  %s247_s1 = sshll.u32 %s305_s0, 4  ;;  %s248_s1 = int_to_ptr.vmem [resolvable:$true] %s247_s1 }
  0x10   :  { %v148_v6 = vunpack.c.0.s8 %v147_v2  ;;  %s279_s17 = scalar_lea.vmem %s248_s1, 256  ;;  %p284_p6 = scmp.lt.s32.totalorder %s248_s1, %s248_s1 }
  0x11   :  { %v32_v7 = vadd.s32 128, %v31_v4  ;;  %v33_v8 = vadd.s32 256, %v31_v4  ;;  %v34_v9 = vadd.s32 384, %v31_v4  ;;  %v39_v10 = vmul.u32 1024, %v26_v3  ;;  %p280_p5 = scmp.ne.s32.totalorder %s248_s1, %s279_s17  ;;  %p285_p7 = scmp.lt.s32.totalorder %s279_s17, %s279_s17 }
  0x12   :  { %v327_v11 = vsub.s32 %v148_v6, %v26_v3  ;;  %v35_v12 = vadd.s32 512, %v31_v4  ;;  %v36_v13 = vadd.s32 640, %v31_v4  ;;  %v37_v14 = vadd.s32 768, %v31_v4 }
  0x13   :  { %v40_v15 = vadd.s32 %v39_v10, %v31_v4  ;;  %v41_v16 = vadd.s32 %v39_v10, %v32_v7  ;;  %v42_v17 = vadd.s32 %v39_v10, %v33_v8  ;;  %v43_v18 = vadd.s32 %v39_v10, %v34_v9  ;;  %p286_p8 = por %p285_p7, %p284_p6 }
  0x14   :  { %v38_v20 = vadd.s32 896, %v31_v4  ;;  %v44_v21 = vadd.s32 %v39_v10, %v35_v12  ;;  %v45_v22 = vadd.s32 %v39_v10, %v36_v13  ;;  %v46_v23 = vadd.s32 %v39_v10, %v37_v14 }
  0x15   :  { %v51_v24 = vadd.s32 %v50_v5, %v40_v15  ;;  %v52_v25 = vadd.s32 %v50_v5, %v41_v16  ;;  %v53_v26 = vadd.s32 %v50_v5, %v42_v17  ;;  %v54_v27 = vadd.s32 %v50_v5, %v43_v18  ;;  %p287_p9 = pnand %p286_p8, %p280_p5 }
  0x16   :  { %v47_v29 = vadd.s32 %v39_v10, %v38_v20  ;;  %v55_v30 = vadd.s32 %v50_v5, %v44_v21  ;;  %v56_v31 = vadd.s32 %v50_v5, %v45_v22  ;;  %v145_v36 = vcombine.high %v141_v28, %v141_v28 }
  0x17   :  { %v59_v32 = vshrl.u32 %v51_v24, 16  ;;  %v60_v33 = vshrl.u32 %v52_v25, 16  ;;  %v61_v34 = vshrl.u32 %v53_v26, 16  ;;  %v62_v35 = vshrl.u32 %v54_v27, 16 }
  0x18   :  { %v330_v37 = vrot.slane %v141_v28, %v327_v11  ;;  %v57_v38 = vadd.s32 %v50_v5, %v46_v23  ;;  %v58_v39 = vadd.s32 %v50_v5, %v47_v29  ;;  %v333_v44 = vrot.slane %v145_v36, %v327_v11 }
  0x19   :  { %v67_v40 = vxor.u32 %v59_v32, %v51_v24  ;;  %v68_v41 = vxor.u32 %v60_v33, %v52_v25  ;;  %v69_v42 = vxor.u32 %v61_v34, %v53_v26  ;;  %v70_v43 = vxor.u32 %v62_v35, %v54_v27 }
  0x1a   :  { %v160_v45 = vcombine.high %v330_v37, %v330_v37  ;;  %v63_v46 = vshrl.u32 %v55_v30, 16  ;;  %v64_v47 = vshrl.u32 %v56_v31, 16  ;;  %v65_v50 = vshrl.u32 %v57_v38, 16 }
  0x1b   :  { %v75_v48 = vmul.u32 2146121005, %v67_v40  ;;  %v76_v49 = vmul.u32 2146121005, %v68_v41  ;;  %v66_v51 = vshrl.u32 %v58_v39, 16  ;;  %v161_v54 = vcombine.high %v333_v44, %v333_v44 }
  0x1c   :  { %v77_v52 = vmul.u32 2146121005, %v69_v42  ;;  %v78_v53 = vmul.u32 2146121005, %v70_v43  ;;  %v71_v55 = vxor.u32 %v63_v46, %v55_v30  ;;  %v72_v58 = vxor.u32 %v64_v47, %v56_v31 }
  0x1d   :  { %v83_v56 = vshrl.u32 %v75_v48, 15  ;;  %v84_v57 = vshrl.u32 %v76_v49, 15  ;;  %v73_v59 = vxor.u32 %v65_v50, %v57_v38  ;;  %v74_v62 = vxor.u32 %v66_v51, %v58_v39 }
  0x1e   :  { %v85_v60 = vshrl.u32 %v77_v52, 15  ;;  %v86_v61 = vshrl.u32 %v78_v53, 15  ;;  %v79_v63 = vmul.u32 2146121005, %v71_v55  ;;  %v80_v2 = vmul.u32 2146121005, %v72_v58 }
  0x1f   :  { %v91_v0 = vxor.u32 %v83_v56, %v75_v48  ;;  %v92_v1 = vxor.u32 %v84_v57, %v76_v49  ;;  %v81_v3 = vmul.u32 2146121005, %v73_v59  ;;  %v82_v6 = vmul.u32 2146121005, %v74_v62  ;;  %v140_v48 = vld [vmem:[#allocation3 + $0x8] sm:$0xff] }
  0x20   :  { %v93_v4 = vxor.u32 %v85_v60, %v77_v52  ;;  %v94_v5 = vxor.u32 %v86_v61, %v78_v53  ;;  %v87_v7 = vshrl.u32 %v79_v63, 15  ;;  %v88_v10 = vshrl.u32 %v80_v2, 15 }
  0x21   :  { %v99_v8 = vmul.u32 2221713035, %v91_v0  ;;  %v100_v9 = vmul.u32 2221713035, %v92_v1  ;;  %v89_v12 = vshrl.u32 %v81_v3, 15  ;;  %v90_v15 = vshrl.u32 %v82_v6, 15 }
  0x22   :  { %v101_v13 = vmul.u32 2221713035, %v93_v4  ;;  %v102_v14 = vmul.u32 2221713035, %v94_v5  ;;  %v95_v16 = vxor.u32 %v87_v7, %v79_v63  ;;  %v96_v19 = vxor.u32 %v88_v10, %v80_v2 }
  0x23   :  { %v107_v17 = vshrl.u32 %v99_v8, 16  ;;  %v108_v18 = vshrl.u32 %v100_v9, 16  ;;  %v97_v20 = vxor.u32 %v89_v12, %v81_v3  ;;  %v98_v23 = vxor.u32 %v90_v15, %v82_v6 }
  0x24   :  { %v109_v21 = vshrl.u32 %v101_v13, 16  ;;  %v110_v22 = vshrl.u32 %v102_v14, 16  ;;  %v103_v24 = vmul.u32 2221713035, %v95_v16  ;;  %v104_v27 = vmul.u32 2221713035, %v96_v19 }
  0x25   :  { %v115_v25 = vxor.u32 %v107_v17, %v99_v8  ;;  %v116_v26 = vxor.u32 %v108_v18, %v100_v9  ;;  %v105_v28 = vmul.u32 2221713035, %v97_v20  ;;  %v106_v31 = vmul.u32 2221713035, %v98_v23 }
  0x26   :  { %v117_v29 = vxor.u32 %v109_v21, %v101_v13  ;;  %v118_v30 = vxor.u32 %v110_v22, %v102_v14  ;;  %v111_v32 = vshrl.u32 %v103_v24, 16  ;;  %v112_v35 = vshrl.u32 %v104_v27, 16 }
  0x27   :  { %v123_v33 = vshrl.u32 %v115_v25, 8  ;;  %v124_v34 = vshrl.u32 %v116_v26, 8  ;;  %v113_v36 = vshrl.u32 %v105_v28, 16  ;;  %v114_v40 = vshrl.u32 %v106_v31, 16 }
  0x28   :  { %v125_v38 = vshrl.u32 %v117_v29, 8  ;;  %v126_v39 = vshrl.u32 %v118_v30, 8  ;;  %v119_v41 = vxor.u32 %v111_v32, %v103_v24  ;;  %v120_v42 = vxor.u32 %v112_v35, %v104_v27 }
  0x29   :  { %vm131_vm0 = vcmp.lt.s32.totalorder %v123_v33, 8388608  ;;  %vm132_vm1 = vcmp.lt.s32.totalorder %v124_v34, 8388608  ;;  %v121_v43 = vxor.u32 %v113_v36, %v105_v28  ;;  %v122_v52 = vxor.u32 %v114_v40, %v106_v31 }
  0x2a   :  { %vm133_vm2 = vcmp.lt.s32.totalorder %v125_v38, 8388608  ;;  %vm134_vm3 = vcmp.lt.s32.totalorder %v126_v39, 8388608  ;;  %v187_v46 = vsel %vm131_vm0, %v330_v37, 0.0  ;;  %v188_v47 = vsel %vm132_vm1, %v160_v45, 0.0 }
  0x2b   :  { %v189_v49 = vsel %vm133_vm2, %v333_v44, 0.0  ;;  %v190_v50 = vsel %vm134_vm3, %v161_v54, 0.0  ;;  %v203_v51 = vcombine.low %v187_v46, %v188_v47  ;;  %v127_v55 = vshrl.u32 %v119_v41, 8 }
  0x2c   :  { %v204_v53 = vcombine.low %v189_v49, %v190_v50  ;;  %v128_v56 = vshrl.u32 %v120_v42, 8  ;;  %v129_v57 = vshrl.u32 %v121_v43, 8  ;;  %v142_v59 = vmul.f32 2.0, %v140_v48 }
  0x2d   :  { %v211_v58 = vrot.slane %v203_v51, %v327_v11  ;;  %v130_v61 = vshrl.u32 %v122_v52, 8  ;;  %vm135_vm4 = vcmp.lt.s32.totalorder %v127_v55, 8388608 }
  0x2e   :  { %v218_v60 = vrot.slane %v204_v53, %v327_v11  ;;  %v162_v62 = vcombine.high %v142_v59, %v142_v59  ;;  %v169_v37 = vrot.slane %v142_v59, %v327_v11  ;;  %vm136_vm5 = vcmp.lt.s32.totalorder %v128_v56, 8388608 }
  0x2f   :  { %vm137_vm6 = vcmp.lt.s32.totalorder %v129_v57, 8388608  ;;  %vm138_vm7 = vcmp.lt.s32.totalorder %v130_v61, 8388608 }
  0x30   :  { %v219_v45 = vcombine.low %v211_v58, %v218_v60  ;;  %v176_v44 = vrot.slane %v162_v62, %v327_v11  ;;  %v177_v54 = vcombine.high %v169_v37, %v169_v37  ;;  %v191_v63 = vsel %vm135_vm4, %v169_v37, 0.0 }
  0x32   :  { %239 = vst [vmem:[#allocation6] sm:$0xff] %v219_v45  ;;  %v178_v0 = vcombine.high %v176_v44, %v176_v44  ;;  %v192_v1 = vsel %vm136_vm5, %v177_v54, 0.0  ;;  %v193_v2 = vsel %vm137_vm6, %v176_v44, 0.0 }
  0x33   :  { %v220_v3 = vcombine.low %v191_v63, %v192_v1 }
  0x34   :  { %v194_v4 = vsel %vm138_vm7, %v178_v0, 0.0 }
  0x35   :  { %v221_v5 = vcombine.low %v193_v2, %v194_v4  ;;  %v228_v6 = vrot.slane %v220_v3, %v327_v11 }
  0x37   :  { %v235_v7 = vrot.slane %v221_v5, %v327_v11 }
  0x39   :  { %v236_v8 = vcombine.low %v228_v6, %v235_v7 }
  0x3b   :  { %240 = vst [vmem:[#allocation6 + $0x8] sm:$0xff] %v236_v8 }
  0x3c   :  { %290 = shalt.err (!%p287_p9)
}
  0x3d   :  { %250 = dma.vmem_to_hbm [thread:$0]  %s248_s1, 256, %s355_s2, [#allocation5]  }
  0x3e   :  { %301 = dma.done.wait [#allocation5], 256  }
  0x3f   :  { %302 = vsyncadd [#allocation5], 4294967040 }
  0x40   :  { %254 = vsyncpa [#allocation4], 1 }
  0x41   :  { %255 = vsyncpa [#allocation5], 1 }

</bundles_post_ra>
